<compile_context>
chip_gen: v5e
topology: v5e:2x2
jax: 0.10.0
libtpu: 0.0.40
codegen_flags: <defaults>
</compile_context>

<pallas_src>
import functools
import math

import jax
import jax.numpy as jnp
from jax.experimental import pallas as pl
from jax.experimental.pallas import tpu as pltpu


# ----------------------- pass 1: GroupNorm + QKV projection -----------------------
def norm_qkv_kernel(x_ref, gamma_ref, beta_ref, gmap_ref, gmapt_ref,
                    wqkv_ref, bqkv_ref,
                    xn_ref, q_ref, k_ref, v_ref,
                    *, n_heads, d_k, scale, eps):
    """One grid step == one batch element.

    x_ref:      [1, S, C]     input (seq-major, channel-last)
    gamma/beta: [1, C]
    gmap_ref:   [C, G]        one-hot channel->group map with 1/(C/G) folded in
    gmapt_ref:  [G, C]        one-hot group->channel broadcast map
    wqkv_ref:   [C, 3*H*dk]   bf16, columns pre-permuted to [Q slab | K slab | V slab]
    bqkv_ref:   [1, 3*H*dk]   fp32 (same permutation)
    xn_ref:     [1, S, C]     fp32 normalized activations (residual path)
    q/k/v_ref:  [1, S, H*dk]  bf16 (softmax scale folded into q)
    """
    x = x_ref[0].astype(jnp.float32)                            # [S, C]

    # GroupNorm statistics in fp32: per (batch, group) over channels-in-group & spatial.
    mean_c = jnp.mean(x, axis=0, keepdims=True)                 # [1, C]
    meansq_c = jnp.mean(x * x, axis=0, keepdims=True)           # [1, C]
    mean_g = jnp.dot(mean_c, gmap_ref[...],
                     preferred_element_type=jnp.float32)        # [1, G]
    meansq_g = jnp.dot(meansq_c, gmap_ref[...],
                       preferred_element_type=jnp.float32)      # [1, G]
    mean_b = jnp.dot(mean_g, gmapt_ref[...],
                     preferred_element_type=jnp.float32)        # [1, C]
    meansq_b = jnp.dot(meansq_g, gmapt_ref[...],
                       preferred_element_type=jnp.float32)      # [1, C]
    var_b = meansq_b - mean_b * mean_b
    inv = jax.lax.rsqrt(var_b + eps)
    xn = (x - mean_b) * (inv * gamma_ref[...]) + beta_ref[...]  # [S, C] fp32
    xn_ref[0] = xn.astype(xn_ref.dtype)

    # QKV projection: bf16 MXU operands, fp32 accumulation.
    qkv = jnp.dot(xn.astype(jnp.bfloat16), wqkv_ref[...],
                  preferred_element_type=jnp.float32) + bqkv_ref[...]   # [S, 3*H*dk]
    hd = n_heads * d_k
    q_ref[0] = (qkv[:, :hd] * scale).astype(q_ref.dtype)        # scale folded into q
    k_ref[0] = qkv[:, hd:2 * hd].astype(k_ref.dtype)
    v_ref[0] = qkv[:, 2 * hd:].astype(v_ref.dtype)


# --------------- pass 2: flash attention + output projection + residual -----------
def flash_attn_kernel(q_ref, k_ref, v_ref, xn_ref, wout_ref, bout_ref,
                      o_ref, m_s, l_s, acc_s, *, n_heads, d_k):
    """Grid = (batch, q-tiles, k-tiles); online softmax state lives in VMEM scratch.

    q_ref:   [1, TQ, H*dk] bf16 (pre-scaled)
    k/v_ref: [1, TK, H*dk] bf16
    xn_ref:  [1, TQ, C]    fp32 (residual)
    wout_ref:[H*dk, C]     bf16
    bout_ref:[1, C]        fp32
    o_ref:   [1, TQ, C]    fp32
    m_s/l_s: [H, TQ, 1]    fp32 scratch
    acc_s:   [H, TQ, dk]   fp32 scratch
    """
    ki = pl.program_id(2)

    @pl.when(ki == 0)
    def _():
        m_s[...] = jnp.full_like(m_s, -jnp.inf)
        l_s[...] = jnp.zeros_like(l_s)
        acc_s[...] = jnp.zeros_like(acc_s)

    q = q_ref[0]                                   # [TQ, H*dk] bf16
    k = k_ref[0]                                   # [TK, H*dk] bf16
    v = v_ref[0]                                   # [TK, H*dk] bf16

    for h in range(n_heads):
        lo, hi = h * d_k, (h + 1) * d_k
        qh, kh, vh = q[:, lo:hi], k[:, lo:hi], v[:, lo:hi]
        # logits via dot_general contracting on dk -> no k.T materialization.
        s = jax.lax.dot_general(qh, kh, (((1,), (1,)), ((), ())),
                                preferred_element_type=jnp.float32)     # [TQ, TK]
        m_prev = m_s[h]                                                  # [TQ, 1]
        m_new = jnp.maximum(m_prev, jnp.max(s, axis=-1, keepdims=True))
        alpha = jnp.exp(m_prev - m_new)
        p = jnp.exp(s - m_new)
        l_s[h] = alpha * l_s[h] + jnp.sum(p, axis=-1, keepdims=True)
        acc_s[h] = alpha * acc_s[h] + jnp.dot(p.astype(v.dtype), vh,
                                              preferred_element_type=jnp.float32)
        m_s[h] = m_new

    @pl.when(ki == pl.num_programs(2) - 1)
    def _():
        out = xn_ref[0] + bout_ref[...]                                  # [TQ, C] fp32
        for h in range(n_heads):
            # softmax normalization on the EUP; per-head output-projection accumulation
            oh = acc_s[h] * pl.reciprocal(l_s[h], approx=True)           # [TQ, dk]
            out = out + jnp.dot(oh.astype(wout_ref.dtype),
                                wout_ref[h * d_k:(h + 1) * d_k, :],
                                preferred_element_type=jnp.float32)
        o_ref[0] = out.astype(o_ref.dtype)


# ----------------------------------- wrapper --------------------------------------
def attention_block(x_nchw, params, *, n_heads, d_k, n_groups, eps=1e-5,
                    block_q=256, block_k=256):
    b, c, hh, ww = x_nchw.shape
    seq = hh * ww
    hd = n_heads * d_k
    assert c % n_groups == 0
    block_q = min(block_q, seq)
    block_k = min(block_k, seq)
    assert seq % block_q == 0 and seq % block_k == 0

    # glue: NCHW -> [b, seq, c]
    x = jnp.transpose(x_nchw.reshape(b, c, seq), (0, 2, 1)).astype(jnp.float32)

    gamma = params["gamma"].reshape(1, c).astype(jnp.float32)
    beta = params["beta"].reshape(1, c).astype(jnp.float32)
    cs = c // n_groups
    onehot = jax.nn.one_hot(jnp.arange(c) // cs, n_groups, dtype=jnp.float32)  # [C, G]
    gmap = onehot / cs          # fold the 1/(C/G) divide into the map
    gmapt = onehot.T            # [G, C] broadcast-back map (no in-kernel transpose)

    # torch w_qkv rows: f = h*3*dk + slab*dk + d.  Re-permute columns of w_qkv.T so
    # Q / K / V are contiguous H*dk-wide, head-major, lane-aligned slabs.
    wqkv = params["w_qkv"].T.reshape(c, n_heads, 3, d_k)
    wqkv = wqkv.transpose(0, 2, 1, 3).reshape(c, 3 * hd).astype(jnp.bfloat16)
    bqkv = params["b_qkv"].reshape(n_heads, 3, d_k).transpose(1, 0, 2)
    bqkv = bqkv.reshape(1, 3 * hd).astype(jnp.float32)
    wout = params["w_out"].T.astype(jnp.bfloat16)            # [H*dk, C], rows head-major
    bout = params["b_out"].reshape(1, c).astype(jnp.float32)

    # Explicit VMEM budget: above the v5e/v6e scoped defaults, headroom below v7x 64 MiB.
    vmem_limit = 48 * 1024 * 1024

    # ---- pass 1: GroupNorm + QKV projection ----
    k1 = functools.partial(norm_qkv_kernel, n_heads=n_heads, d_k=d_k,
                           scale=d_k ** (-0.5), eps=eps)
    xn, q, kk, v = pl.pallas_call(
        k1,
        out_shape=(
            jax.ShapeDtypeStruct((b, seq, c), jnp.float32),
            jax.ShapeDtypeStruct((b, seq, hd), jnp.bfloat16),
            jax.ShapeDtypeStruct((b, seq, hd), jnp.bfloat16),
            jax.ShapeDtypeStruct((b, seq, hd), jnp.bfloat16),
        ),
        grid_spec=pltpu.PrefetchScalarGridSpec(
            num_scalar_prefetch=0,
            grid=(b,),
            in_specs=[
                pl.BlockSpec((1, seq, c), lambda i: (i, 0, 0)),          # x
                pl.BlockSpec((1, c), lambda i: (0, 0)),                  # gamma
                pl.BlockSpec((1, c), lambda i: (0, 0)),                  # beta
                pl.BlockSpec((c, n_groups), lambda i: (0, 0)),           # gmap (scaled)
                pl.BlockSpec((n_groups, c), lambda i: (0, 0)),           # gmap^T
                pl.BlockSpec((c, 3 * hd), lambda i: (0, 0)),             # w_qkv (bf16)
                pl.BlockSpec((1, 3 * hd), lambda i: (0, 0)),             # b_qkv
            ],
            out_specs=[
                pl.BlockSpec((1, seq, c), lambda i: (i, 0, 0)),          # xn
                pl.BlockSpec((1, seq, hd), lambda i: (i, 0, 0)),         # q
                pl.BlockSpec((1, seq, hd), lambda i: (i, 0, 0)),         # k
                pl.BlockSpec((1, seq, hd), lambda i: (i, 0, 0)),         # v
            ],
        ),
        compiler_params=pltpu.CompilerParams(
            dimension_semantics=("parallel",),
            vmem_limit_bytes=vmem_limit),
    )(x, gamma, beta, gmap, gmapt, wqkv, bqkv)
    # TODO(synk): for very large S*C the per-batch GroupNorm pass itself could be
    # further tiled over S with a two-pass statistics reduction.

    # ---- pass 2: flash attention + output projection + residual ----
    k2 = functools.partial(flash_attn_kernel, n_heads=n_heads, d_k=d_k)
    out = pl.pallas_call(
        k2,
        out_shape=jax.ShapeDtypeStruct((b, seq, c), jnp.float32),
        grid_spec=pltpu.PrefetchScalarGridSpec(
            num_scalar_prefetch=0,
            grid=(b, seq // block_q, seq // block_k),
            in_specs=[
                pl.BlockSpec((1, block_q, hd), lambda bi, qi, ki: (bi, qi, 0)),  # q
                pl.BlockSpec((1, block_k, hd), lambda bi, qi, ki: (bi, ki, 0)),  # k
                pl.BlockSpec((1, block_k, hd), lambda bi, qi, ki: (bi, ki, 0)),  # v
                pl.BlockSpec((1, block_q, c), lambda bi, qi, ki: (bi, qi, 0)),   # xn (residual)
                pl.BlockSpec((hd, c), lambda bi, qi, ki: (0, 0)),                # w_out
                pl.BlockSpec((1, c), lambda bi, qi, ki: (0, 0)),                 # b_out
            ],
            out_specs=pl.BlockSpec((1, block_q, c), lambda bi, qi, ki: (bi, qi, 0)),
            scratch_shapes=[
                pltpu.VMEM((n_heads, block_q, 1), jnp.float32),     # m (running max)
                pltpu.VMEM((n_heads, block_q, 1), jnp.float32),     # l (running sum)
                pltpu.VMEM((n_heads, block_q, d_k), jnp.float32),   # acc (running PV)
            ],
        ),
        compiler_params=pltpu.CompilerParams(
            dimension_semantics=("parallel", "parallel", "arbitrary"),
            vmem_limit_bytes=vmem_limit),
    )(q, kk, v, xn, wout, bout)

    # glue: [b, seq, c] -> NCHW
    return jnp.transpose(out, (0, 2, 1)).reshape(b, c, hh, ww)


# ---------------------------------- reference --------------------------------------
def reference(x_nchw, params, *, n_heads, d_k, n_groups, eps=1e-5):
    """Pure-JAX (fp32) mirror of the PyTorch forward, for verification."""
    b, c, hh, ww = x_nchw.shape
    xg = x_nchw.reshape(b, n_groups, c // n_groups, hh, ww)
    mean = xg.mean(axis=(2, 3, 4), keepdims=True)
    var = xg.var(axis=(2, 3, 4), keepdims=True)
    xn = (xg - mean) / jnp.sqrt(var + eps)
    xn = xn.reshape(b, c, hh, ww)
    xn = xn * params["gamma"][None, :, None, None] + params["beta"][None, :, None, None]
    x = jnp.transpose(xn.reshape(b, c, -1), (0, 2, 1))           # [b, seq, c]
    qkv = x @ params["w_qkv"].T + params["b_qkv"]
    qkv = qkv.reshape(b, -1, n_heads, 3 * d_k)
    q, k, v = jnp.split(qkv, 3, axis=-1)
    attn = jnp.einsum("bihd,bjhd->bijh", q, k) * (d_k ** (-0.5))
    attn = jax.nn.softmax(attn, axis=2)
    h = jnp.einsum("bijh,bjhd->bihd", attn, v)
    h = h.reshape(b, -1, n_heads * d_k)
    h = h @ params["w_out"].T + params["b_out"]
    h = h + x
    return jnp.transpose(h, (0, 2, 1)).reshape(b, c, hh, ww)


def init_params(key, n_channels, n_heads, d_k):
    k1, k2, k3, k4 = jax.random.split(key, 4)
    proj_out = n_heads * d_k * 3
    lim1 = 1.0 / math.sqrt(n_channels)
    lim2 = 1.0 / math.sqrt(n_heads * d_k)
    return {
        "gamma": jnp.ones((n_channels,), jnp.float32),
        "beta": jnp.zeros((n_channels,), jnp.float32),
        "w_qkv": jax.random.uniform(k1, (proj_out, n_channels), jnp.float32, -lim1, lim1),
        "b_qkv": jax.random.uniform(k2, (proj_out,), jnp.float32, -lim1, lim1),
        "w_out": jax.random.uniform(k3, (n_channels, n_heads * d_k), jnp.float32, -lim2, lim2),
        "b_out": jax.random.uniform(k4, (n_channels,), jnp.float32, -lim2, lim2),
    }


if __name__ == "__main__":
    # Small config consistent with the module: d_k defaults to n_channels.
    batch, n_channels, height, width = 2, 32, 8, 8
    n_heads, n_groups = 4, 8
    d_k = n_channels  # d_k=None in the module -> n_channels

    key = jax.random.PRNGKey(0)
    kx, kp = jax.random.split(key)
    x = jax.random.normal(kx, (batch, n_channels, height, width), jnp.float32)
    params = init_params(kp, n_channels, n_heads, d_k)

    out = attention_block(x, params, n_heads=n_heads, d_k=d_k, n_groups=n_groups)
    out = jax.block_until_ready(out)

    ref = reference(x, params, n_heads=n_heads, d_k=d_k, n_groups=n_groups)
    assert out.shape == (batch, n_channels, height, width)
    err = float(jnp.max(jnp.abs(out - ref)))
    # bf16 MXU operands (fp32 accumulation, fp32 GroupNorm/softmax stats) -> relaxed tol.
    assert jnp.allclose(out, ref, atol=2e-2, rtol=2e-2), err

    print("KERNEL_OK")
</pallas_src>

<mosaic_0001>
module attributes {stable_mosaic.version = 11 : i64} {
  func.func @norm_qkv_kernel(%arg0: i32, %arg1: memref<1x64x32xf32, #tpu.memory_space<vmem>>, %arg2: memref<1x32xf32, #tpu.memory_space<vmem>>, %arg3: memref<1x32xf32, #tpu.memory_space<vmem>>, %arg4: memref<32x8xf32, #tpu.memory_space<vmem>>, %arg5: memref<8x32xf32, #tpu.memory_space<vmem>>, %arg6: memref<32x384xbf16, #tpu.memory_space<vmem>>, %arg7: memref<1x384xf32, #tpu.memory_space<vmem>>, %arg8: memref<1x64x32xf32, #tpu.memory_space<vmem>>, %arg9: memref<1x64x128xbf16, #tpu.memory_space<vmem>>, %arg10: memref<1x64x128xbf16, #tpu.memory_space<vmem>>, %arg11: memref<1x64x128xbf16, #tpu.memory_space<vmem>>) attributes {dimension_semantics = [#tpu.dimension_semantics<parallel>], iteration_bounds = array<i64: 2>, scalar_prefetch = 0 : i64, scratch_operands = 0 : i64, tpu.core_type = #tpu.core_type<tc>, window_params = [{transform_indices = @transform_0, window_bounds = array<i64: 1, 64, 32>}, {pipeline_mode = #tpu.pipeline_mode<synchronous>, transform_indices = @transform_1, window_bounds = array<i64: 1, 32>}, {pipeline_mode = #tpu.pipeline_mode<synchronous>, transform_indices = @transform_2, window_bounds = array<i64: 1, 32>}, {pipeline_mode = #tpu.pipeline_mode<synchronous>, transform_indices = @transform_3, window_bounds = array<i64: 32, 8>}, {pipeline_mode = #tpu.pipeline_mode<synchronous>, transform_indices = @transform_4, window_bounds = array<i64: 8, 32>}, {pipeline_mode = #tpu.pipeline_mode<synchronous>, transform_indices = @transform_5, window_bounds = array<i64: 32, 384>}, {pipeline_mode = #tpu.pipeline_mode<synchronous>, transform_indices = @transform_6, window_bounds = array<i64: 1, 384>}, {transform_indices = @transform_7, window_bounds = array<i64: 1, 64, 32>}, {transform_indices = @transform_8, window_bounds = array<i64: 1, 64, 128>}, {transform_indices = @transform_9, window_bounds = array<i64: 1, 64, 128>}, {transform_indices = @transform_10, window_bounds = array<i64: 1, 64, 128>}]} {
    %c0 = arith.constant 0 : index
    %c0_0 = arith.constant 0 : index
    %c0_1 = arith.constant 0 : index
    %0 = vector.load %arg1[%c0, %c0_0, %c0_1] : memref<1x64x32xf32, #tpu.memory_space<vmem>>, vector<1x64x32xf32>
    %1 = vector.shape_cast %0 : vector<1x64x32xf32> to vector<64x32xf32>
    %cst = arith.constant dense<0.000000e+00> : vector<32xf32>
    %2 = vector.multi_reduction <add>, %1, %cst [0] : vector<64x32xf32> to vector<32xf32>
    %3 = vector.shape_cast %2 : vector<32xf32> to vector<1x32xf32>
    %cst_2 = arith.constant 6.400000e+01 : f32
    %4 = vector.broadcast %cst_2 : f32 to vector<1x32xf32>
    %5 = arith.divf %3, %4 : vector<1x32xf32>
    %6 = arith.mulf %1, %1 : vector<64x32xf32>
    %cst_3 = arith.constant dense<0.000000e+00> : vector<32xf32>
    %7 = vector.multi_reduction <add>, %6, %cst_3 [0] : vector<64x32xf32> to vector<32xf32>
    %8 = vector.shape_cast %7 : vector<32xf32> to vector<1x32xf32>
    %cst_4 = arith.constant 6.400000e+01 : f32
    %9 = vector.broadcast %cst_4 : f32 to vector<1x32xf32>
    %10 = arith.divf %8, %9 : vector<1x32xf32>
    %c0_5 = arith.constant 0 : index
    %c0_6 = arith.constant 0 : index
    %11 = vector.load %arg4[%c0_5, %c0_6] : memref<32x8xf32, #tpu.memory_space<vmem>>, vector<32x8xf32>
    %cst_7 = arith.constant dense<0.000000e+00> : vector<1x8xf32>
    %12 = tpu.matmul %5, %11, %cst_7 {dimension_numbers = #tpu.dot_dimension_numbers<[1], [0], [0], [1], [0, 0, 1, 1], [], []>} : vector<1x32xf32>, vector<32x8xf32>, vector<1x8xf32> -> vector<1x8xf32>
    %c0_8 = arith.constant 0 : index
    %c0_9 = arith.constant 0 : index
    %13 = vector.load %arg4[%c0_8, %c0_9] : memref<32x8xf32, #tpu.memory_space<vmem>>, vector<32x8xf32>
    %cst_10 = arith.constant dense<0.000000e+00> : vector<1x8xf32>
    %14 = tpu.matmul %10, %13, %cst_10 {dimension_numbers = #tpu.dot_dimension_numbers<[1], [0], [0], [1], [0, 0, 1, 1], [], []>} : vector<1x32xf32>, vector<32x8xf32>, vector<1x8xf32> -> vector<1x8xf32>
    %c0_11 = arith.constant 0 : index
    %c0_12 = arith.constant 0 : index
    %15 = vector.load %arg5[%c0_11, %c0_12] : memref<8x32xf32, #tpu.memory_space<vmem>>, vector<8x32xf32>
    %cst_13 = arith.constant dense<0.000000e+00> : vector<1x32xf32>
    %16 = tpu.matmul %12, %15, %cst_13 {dimension_numbers = #tpu.dot_dimension_numbers<[1], [0], [0], [1], [0, 0, 1, 1], [], []>} : vector<1x8xf32>, vector<8x32xf32>, vector<1x32xf32> -> vector<1x32xf32>
    %c0_14 = arith.constant 0 : index
    %c0_15 = arith.constant 0 : index
    %17 = vector.load %arg5[%c0_14, %c0_15] : memref<8x32xf32, #tpu.memory_space<vmem>>, vector<8x32xf32>
    %cst_16 = arith.constant dense<0.000000e+00> : vector<1x32xf32>
    %18 = tpu.matmul %14, %17, %cst_16 {dimension_numbers = #tpu.dot_dimension_numbers<[1], [0], [0], [1], [0, 0, 1, 1], [], []>} : vector<1x8xf32>, vector<8x32xf32>, vector<1x32xf32> -> vector<1x32xf32>
    %19 = arith.mulf %16, %16 : vector<1x32xf32>
    %20 = arith.subf %18, %19 : vector<1x32xf32>
    %cst_17 = arith.constant 9.99999974E-6 : f32
    %21 = vector.broadcast %cst_17 : f32 to vector<1x32xf32>
    %22 = arith.addf %20, %21 : vector<1x32xf32>
    %23 = math.rsqrt %22 : vector<1x32xf32>
    %24 = vector.broadcast %16 : vector<1x32xf32> to vector<64x32xf32>
    %25 = arith.subf %1, %24 : vector<64x32xf32>
    %c0_18 = arith.constant 0 : index
    %c0_19 = arith.constant 0 : index
    %26 = vector.load %arg2[%c0_18, %c0_19] : memref<1x32xf32, #tpu.memory_space<vmem>>, vector<1x32xf32>
    %27 = arith.mulf %23, %26 : vector<1x32xf32>
    %28 = vector.broadcast %27 : vector<1x32xf32> to vector<64x32xf32>
    %29 = arith.mulf %25, %28 : vector<64x32xf32>
    %c0_20 = arith.constant 0 : index
    %c0_21 = arith.constant 0 : index
    %30 = vector.load %arg3[%c0_20, %c0_21] : memref<1x32xf32, #tpu.memory_space<vmem>>, vector<1x32xf32>
    %31 = vector.broadcast %30 : vector<1x32xf32> to vector<64x32xf32>
    %32 = arith.addf %29, %31 : vector<64x32xf32>
    %c0_22 = arith.constant 0 : index
    %c0_23 = arith.constant 0 : index
    %c0_24 = arith.constant 0 : index
    %33 = vector.load %arg8[%c0_22, %c0_23, %c0_24] : memref<1x64x32xf32, #tpu.memory_space<vmem>>, vector<1x64x32xf32>
    %34 = vector.shape_cast %33 : vector<1x64x32xf32> to vector<64x32xf32>
    %35 = vector.shape_cast %32 : vector<64x32xf32> to vector<1x64x32xf32>
    tpu.vector_store %arg8[%c0_22, %c0_23, %c0_24], %35 {strides = array<i32>} : memref<1x64x32xf32, #tpu.memory_space<vmem>>, vector<1x64x32xf32>,
    %36 = arith.truncf %32 : vector<64x32xf32> to vector<64x32xbf16>
    %c0_25 = arith.constant 0 : index
    %c0_26 = arith.constant 0 : index
    %37 = vector.load %arg6[%c0_25, %c0_26] : memref<32x384xbf16, #tpu.memory_space<vmem>>, vector<32x384xbf16>
    %cst_27 = arith.constant dense<0.000000e+00> : vector<64x384xf32>
    %38 = tpu.matmul %36, %37, %cst_27 {dimension_numbers = #tpu.dot_dimension_numbers<[1], [0], [0], [1], [0, 0, 1, 1], [], []>} : vector<64x32xbf16>, vector<32x384xbf16>, vector<64x384xf32> -> vector<64x384xf32>
    %c0_28 = arith.constant 0 : index
    %c0_29 = arith.constant 0 : index
    %39 = vector.load %arg7[%c0_28, %c0_29] : memref<1x384xf32, #tpu.memory_space<vmem>>, vector<1x384xf32>
    %40 = vector.broadcast %39 : vector<1x384xf32> to vector<64x384xf32>
    %41 = arith.addf %38, %40 : vector<64x384xf32>
    %42 = vector.extract_strided_slice %41 {offsets = [0, 0], sizes = [64, 128], strides = [1, 1]} : vector<64x384xf32> to vector<64x128xf32>
    %cst_30 = arith.constant 0.176776692 : f32
    %43 = vector.broadcast %cst_30 : f32 to vector<64x128xf32>
    %44 = arith.mulf %42, %43 : vector<64x128xf32>
    %45 = arith.truncf %44 : vector<64x128xf32> to vector<64x128xbf16>
    %c0_31 = arith.constant 0 : index
    %c0_32 = arith.constant 0 : index
    %c0_33 = arith.constant 0 : index
    %46 = vector.load %arg9[%c0_31, %c0_32, %c0_33] : memref<1x64x128xbf16, #tpu.memory_space<vmem>>, vector<1x64x128xbf16>
    %47 = vector.shape_cast %46 : vector<1x64x128xbf16> to vector<64x128xbf16>
    %48 = vector.shape_cast %45 : vector<64x128xbf16> to vector<1x64x128xbf16>
    tpu.vector_store %arg9[%c0_31, %c0_32, %c0_33], %48 {strides = array<i32>} : memref<1x64x128xbf16, #tpu.memory_space<vmem>>, vector<1x64x128xbf16>,
    %49 = vector.extract_strided_slice %41 {offsets = [0, 128], sizes = [64, 128], strides = [1, 1]} : vector<64x384xf32> to vector<64x128xf32>
    %50 = arith.truncf %49 : vector<64x128xf32> to vector<64x128xbf16>
    %c0_34 = arith.constant 0 : index
    %c0_35 = arith.constant 0 : index
    %c0_36 = arith.constant 0 : index
    %51 = vector.load %arg10[%c0_34, %c0_35, %c0_36] : memref<1x64x128xbf16, #tpu.memory_space<vmem>>, vector<1x64x128xbf16>
    %52 = vector.shape_cast %51 : vector<1x64x128xbf16> to vector<64x128xbf16>
    %53 = vector.shape_cast %50 : vector<64x128xbf16> to vector<1x64x128xbf16>
    tpu.vector_store %arg10[%c0_34, %c0_35, %c0_36], %53 {strides = array<i32>} : memref<1x64x128xbf16, #tpu.memory_space<vmem>>, vector<1x64x128xbf16>,
    %54 = vector.extract_strided_slice %41 {offsets = [0, 256], sizes = [64, 128], strides = [1, 1]} : vector<64x384xf32> to vector<64x128xf32>
    %55 = arith.truncf %54 : vector<64x128xf32> to vector<64x128xbf16>
    %c0_37 = arith.constant 0 : index
    %c0_38 = arith.constant 0 : index
    %c0_39 = arith.constant 0 : index
    %56 = vector.load %arg11[%c0_37, %c0_38, %c0_39] : memref<1x64x128xbf16, #tpu.memory_space<vmem>>, vector<1x64x128xbf16>
    %57 = vector.shape_cast %56 : vector<1x64x128xbf16> to vector<64x128xbf16>
    %58 = vector.shape_cast %55 : vector<64x128xbf16> to vector<1x64x128xbf16>
    tpu.vector_store %arg11[%c0_37, %c0_38, %c0_39], %58 {strides = array<i32>} : memref<1x64x128xbf16, #tpu.memory_space<vmem>>, vector<1x64x128xbf16>,
    return
  }
  func.func @transform_0(%arg0: i32) -> (i32, i32, i32) {
    %c0_i32 = arith.constant 0 : i32
    %c0_i32_0 = arith.constant 0 : i32
    %c0_i32_1 = arith.constant 0 : i32
    return %arg0, %c0_i32, %c0_i32_0 : i32, i32, i32
  }
  func.func @transform_1(%arg0: i32) -> (i32, i32) {
    %c0_i32 = arith.constant 0 : i32
    %c0_i32_0 = arith.constant 0 : i32
    %c0_i32_1 = arith.constant 0 : i32
    return %c0_i32, %c0_i32_0 : i32, i32
  }
  func.func @transform_2(%arg0: i32) -> (i32, i32) {
    %c0_i32 = arith.constant 0 : i32
    %c0_i32_0 = arith.constant 0 : i32
    %c0_i32_1 = arith.constant 0 : i32
    return %c0_i32, %c0_i32_0 : i32, i32
  }
  func.func @transform_3(%arg0: i32) -> (i32, i32) {
    %c0_i32 = arith.constant 0 : i32
    %c0_i32_0 = arith.constant 0 : i32
    %c0_i32_1 = arith.constant 0 : i32
    return %c0_i32, %c0_i32_0 : i32, i32
  }
  func.func @transform_4(%arg0: i32) -> (i32, i32) {
    %c0_i32 = arith.constant 0 : i32
    %c0_i32_0 = arith.constant 0 : i32
    %c0_i32_1 = arith.constant 0 : i32
    return %c0_i32, %c0_i32_0 : i32, i32
  }
  func.func @transform_5(%arg0: i32) -> (i32, i32) {
    %c0_i32 = arith.constant 0 : i32
    %c0_i32_0 = arith.constant 0 : i32
    %c0_i32_1 = arith.constant 0 : i32
    return %c0_i32, %c0_i32_0 : i32, i32
  }
  func.func @transform_6(%arg0: i32) -> (i32, i32) {
    %c0_i32 = arith.constant 0 : i32
    %c0_i32_0 = arith.constant 0 : i32
    %c0_i32_1 = arith.constant 0 : i32
    return %c0_i32, %c0_i32_0 : i32, i32
  }
  func.func @transform_7(%arg0: i32) -> (i32, i32, i32) {
    %c0_i32 = arith.constant 0 : i32
    %c0_i32_0 = arith.constant 0 : i32
    %c0_i32_1 = arith.constant 0 : i32
    return %arg0, %c0_i32, %c0_i32_0 : i32, i32, i32
  }
  func.func @transform_8(%arg0: i32) -> (i32, i32, i32) {
    %c0_i32 = arith.constant 0 : i32
    %c0_i32_0 = arith.constant 0 : i32
    %c0_i32_1 = arith.constant 0 : i32
    return %arg0, %c0_i32, %c0_i32_0 : i32, i32, i32
  }
  func.func @transform_9(%arg0: i32) -> (i32, i32, i32) {
    %c0_i32 = arith.constant 0 : i32
    %c0_i32_0 = arith.constant 0 : i32
    %c0_i32_1 = arith.constant 0 : i32
    return %arg0, %c0_i32, %c0_i32_0 : i32, i32, i32
  }
  func.func @transform_10(%arg0: i32) -> (i32, i32, i32) {
    %c0_i32 = arith.constant 0 : i32
    %c0_i32_0 = arith.constant 0 : i32
    %c0_i32_1 = arith.constant 0 : i32
    return %arg0, %c0_i32, %c0_i32_0 : i32, i32, i32
  }
}

</mosaic_0001>

<bundles_post_ra>
// kernel: tpu_custom_call.1
= control target key start
LH: loop header
LB: loop body
LE: loop exit
PB: predicated region body
PF: predicated region fallthrough
CT: control target
= control target key end

     0   :  { %s1782_s0 = inlined_call_operand.vmem [shape: f32[2,64,32], index: 0, kind: input, shape index: {}]   ;;  %s1783_s1 = inlined_call_operand.vmem [shape: f32[1,32], index: 1, kind: input, shape index: {}]   ;;  %s1784_s2 = inlined_call_operand.vmem [shape: f32[1,32], index: 2, kind: input, shape index: {}]   ;;  %s1785_s3 = inlined_call_operand.vmem [shape: f32[32,8], index: 3, kind: input, shape index: {}]   ;;  %s1786_s4 = inlined_call_operand.vmem [shape: f32[8,32], index: 4, kind: input, shape index: {}]   ;;  %s1787_s5 = inlined_call_operand.vmem [shape: bf16[32,384], index: 5, kind: input, shape index: {}]   ;;  %s1788_s6 = inlined_call_operand.vmem [shape: f32[1,384], index: 6, kind: input, shape index: {}]   ;;  %s1789_s7 = inlined_call_operand.vmem [shape: f32[2,64,32], index: 7, kind: output, shape index: {0}]   ;;  %s1790_s8 = inlined_call_operand.hbm [shape: bf16[2,64,128], index: 8, kind: output, shape index: {1}]   ;;  %s1791_s9 = inlined_call_operand.hbm [shape: bf16[2,64,128], index: 9, kind: output, shape index: {2}]   ;;  %s1792_s10 = inlined_call_operand.hbm [shape: bf16[2,64,128], index: 10, kind: output, shape index: {3}]  }
   0x1   :  { %1798 = sst [smem:[#allocation10_spill]] %s1782_s0 }
   0x2   :  { %1799 = sst [smem:[#allocation11_spill]] %s1783_s1 }
   0x3   :  { %1800 = sst [smem:[#allocation12_spill]] %s1784_s2 }
   0x4   :  { %1801 = sst [smem:[#allocation13_spill]] %s1785_s3 }
   0x5   :  { %1802 = sst [smem:[#allocation14_spill]] %s1786_s4 }
   0x6   :  { %1803 = sst [smem:[#allocation15_spill]] %s1787_s5 }
   0x7   :  { %16 = vsyncpa [#allocation3], 0 }
   0x8   :  { %18 = vsyncpa [#allocation3 + $0x1], 0 }
   0x9   :  { %19 = vsyncpa [#allocation5], 0 }
   0xa   :  { %21 = vsyncpa [#allocation5 + $0x1], 0  ;;  %s1416_s13 = smov 0   ;;  %s1418_s14 = smov 0  }
   0xb   :  { %s1420_s15 = smov 0   ;;  %s1422_s16 = smov 0  }
   0xc LB: > { %s1437_s17 = sadd.s32 4294967295, %s1356_s16   ;;  %s1793_s18 = sadd.s32 4294967294, %s1356_s16   ;;  %s1356_s16 = sphi %s1422_s16, %s1822_s16   ;;  %s1352_s15 = sphi %s1420_s15, %s1821_s15   ;;  %s1348_s14 = sphi %s1418_s14, %s1820_s14   ;;  %s1344_s13 = sphi %s1416_s13, %s1819_s13  }
   0xd   : > { %s1441_s19 = sadd.s32 1, %s1356_s16   ;;  %s212_s20 = sadd.s32 1, %s1352_s15 }
   0xe   : > { %s209_s21 = ssub.s32 %s1356_s16, %s1441_s19  ;;  %p222_p0 = scmp.ne.s32.totalorder %s1352_s15, %s1348_s14 }
   0xf   : > { %p210_p1 = scmp.eq.s32.totalorder %s209_s21, 0  ;;  %p223_p2 = scmp.eq.s32.totalorder %s1437_s17, 1 }
  0x10   : > { %p228_p3 = scmp.ne.s32.totalorder %s1348_s14, %s1344_s13  ;;  %p229_p4 = scmp.eq.s32.totalorder %s1793_s18, 1 }
  0x11   : > { %s1454_s22 = scalar_select %p210_p1, %s1352_s15, %s212_s20  }
  0x12   : > { %p1456_p5 = por %p223_p2, %p222_p0  ;;  %p1460_p6 = por %p229_p4, %p228_p3 }
  0x13   : > { %p1036_p7 = scmp.ge.s32.totalorder %s1356_s16, 1  ;;  %p325_p8 = scmp.lt.s32.totalorder %s1356_s16, 3 }
  0x15   : > { %p326_p9 = pnand %p1036_p7, %p325_p8 }
  0x17   : > { %329 = sbr.rel (%p326_p9) target bundleno = 585 (0x249), region = 48 }
  0x1c   : > { %s1806_s3 = sld [smem:[#allocation13_spill]]  ;;  %p378_p10 = scmp.lt.s32.totalorder %s1437_s17, 1  ;;  %vm397_vm0 = vcmask 261120   ;;  %v1358_v7 = vmov 64.0   ;;  %vm508_vm2 = vcmask 64512  }
  0x1d   : > { %s1807_s0 = sld [smem:[#allocation10_spill]]  ;;  %1230 = vrcp.f32 %v1358_v7  ;;  %s1795_s25 = sand.u32 1, %s1348_s14  }
  0x1e   : > { %s1477_s11 = scalar_select %p378_p10, %s1437_s17, 1 }
  0x1f   : > { %s1808_s4 = sld [smem:[#allocation14_spill]]  ;;  %s1037_s26 = sshll.u32 %s1795_s25, 5 }
  0x20   : > { %s1794_s21 = sshll.u32 %s1477_s11, 6  ;;  %s1809_s5 = sld [smem:[#allocation15_spill]] }
  0x21   : > { %s1810_s1 = sld [smem:[#allocation11_spill]]  ;;  %s1812_s18 = sshll.u32 %s1477_s11, 6 }
  0x22   : > { %v460_v0 = vld [vmem:[%s1806_s3 + $0x18] sm:$0xff]  ;;  %v459_v1 = vld [vmem:[%s1806_s3 + $0x10] sm:$0xff]  ;;  %v458_v2 = vld [vmem:[%s1806_s3 + $0x8] sm:$0xff]  ;;  %s1811_s2 = sld [smem:[#allocation12_spill]]  ;;  %s387_s12 = scalar_lea.vmem %s1789_s7, %s1812_s18 }
  0x23   : > { %476 = vmatpush.msra.mxu0 %v460_v0  ;;  %499 = vmatpush.msra.mxu1 %v460_v0  ;;  %v457_v3 = vld [vmem:[%s1806_s3] sm:$0xff]  ;;  %s1488_s27 = scalar_lea.vmem %s1807_s0, %s1794_s21  ;;  %v1231_v23 = vpop.eup %1230  ;;  %s1652_s28 = scalar_lea.vmem [#allocation4], %s1037_s26 }
  0x24   : > { %v1491_v4 = vld [vmem:[%s1488_s27] sm:$0xff]  ;;  %v1494_v5 = vld [vmem:[%s1488_s27 + $0x8] sm:$0xff]  ;;  %v1497_v6 = vld [vmem:[%s1488_s27 + $0x10] sm:$0xff]  ;;  %v420_v37 = vmul.f32 64.0, %v1231_v23  ;;  %vm424_vm1 = vweird.f32 %v1231_v23  ;;  %s1655_s29 = scalar_lea.vmem [#allocation2], %s1037_s26  ;;  %s1103_s18 = sshll.u32 %s1437_s17, 5 }
  0x25   : > { %477 = vmatpush.msra.mxu0 %v459_v1  ;;  %500 = vmatpush.msra.mxu1 %v459_v1  ;;  %v1500_v8 = vld [vmem:[%s1488_s27 + $0x18] sm:$0xff]  ;;  %v398_v9 = vsel %vm397_vm0, %v1491_v4, 0.0  ;;  %v399_v10 = vsel %vm397_vm0, %v1494_v5, 0.0  ;;  %v401_v11 = vsel %vm397_vm0, %v1497_v6, 0.0  ;;  %v1509_v12 = vld [vmem:[%s1488_s27 + $0x20] sm:$0xff]  ;;  %v427_v14 = vmul.f32 %v1491_v4, %v1491_v4  ;;  %v1519_v17 = vld [vmem:[%s1488_s27 + $0x28] sm:$0xff]  ;;  %s862_s20 = scalar_lea.hbm %s1791_s9, %s1103_s18 }
  0x26   : > { %v400_v13 = vadd.f32 %v399_v10, %v398_v9  ;;  %v403_v15 = vsel %vm397_vm0, %v1500_v8, 0.0  ;;  %v507_v16 = vld [vmem:[%s1808_s4] sm:$0xff]  ;;  %v428_v19 = vmul.f32 %v1494_v5, %v1494_v5  ;;  %v429_v20 = vmul.f32 %v1497_v6, %v1497_v6  ;;  %v1530_v24 = vld [vmem:[%s1488_s27 + $0x30] sm:$0xff]  ;;  %v1540_v32 = vld [vmem:[%s1488_s27 + $0x38] sm:$0xff]  ;;  %s1645_s27 = scalar_lea.vmem [#allocation6], %s1037_s26  ;;  %s863_s30 = sshll.u32 %s1652_s28, 4  ;;  %s1687_s30 = int_to_ptr.vmem [resolvable:$true] %s863_s30 }
  0x27   : > { %478 = vmatpush.msra.mxu0 %v458_v2  ;;  %501 = vmatpush.msra.mxu1 %v458_v2  ;;  %v430_v21 = vmul.f32 %v1500_v8, %v1500_v8  ;;  %v405_v22 = vsel %vm397_vm0, %v1509_v12, 0.0  ;;  %v431_v26 = vmul.f32 %v1509_v12, %v1509_v12  ;;  %v435_v27 = vsel %vm397_vm0, %v427_v14, 0.0  ;;  %s880_s21 = sshll.u32 %s1645_s27, 4  ;;  %s846_s26 = sshll.u32 %s1655_s29, 4  ;;  %s1699_s21 = int_to_ptr.vmem [resolvable:$true] %s880_s21  ;;  %s1701_s26 = int_to_ptr.vmem [resolvable:$true] %s846_s26 }
  0x28   : > { %v402_v18 = vadd.f32 %v401_v11, %v400_v13  ;;  %v436_v28 = vsel %vm397_vm0, %v428_v19, 0.0  ;;  %v407_v29 = vsel %vm397_vm0, %v1519_v17, 0.0  ;;  %v438_v31 = vsel %vm397_vm0, %v429_v20, 0.0  ;;  %s825_s25 = sand.u32 1, %s1437_s17  }
  0x29   : > { %479 = vmatpush.msra.mxu0 %v457_v3  ;;  %502 = vmatpush.msra.mxu1 %v457_v3  ;;  %v437_v30 = vadd.f32 %v436_v28, %v435_v27  ;;  %v432_v34 = vmul.f32 %v1519_v17, %v1519_v17  ;;  %v440_v35 = vsel %vm397_vm0, %v430_v21, 0.0  ;;  %v409_v36 = vsel %vm397_vm0, %v1530_v24, 0.0  ;;  %v1064_v21 = vld [vmem:[%s1809_s5 + $0x24] sm:$0xf0]  ;;  %v1050_v27 = vld [vmem:[%s1809_s5] sm:$0xf] }
  0x2a   : > { %v404_v25 = vadd.f32 %v403_v15, %v402_v18  ;;  %v433_v40 = vmul.f32 %v1530_v24, %v1530_v24  ;;  %v442_v41 = vsel %vm397_vm0, %v431_v26, 0.0  ;;  %v411_v42 = vsel %vm397_vm0, %v1540_v32, 0.0  ;;  %v1062_v15 = vld [vmem:[%s1809_s5 + $0x18] sm:$0xf]  ;;  %v1101_v18 = vld [vmem:[%s1809_s5 + $0x20] sm:$0xf0] }
  0x2b   : > { %527 = vmatpush.msrb.mxu0 %v507_v16  ;;  %v439_v38 = vadd.f32 %v438_v31, %v437_v30  ;;  %v434_v45 = vmul.f32 %v1540_v32, %v1540_v32  ;;  %v444_v46 = vsel %vm397_vm0, %v432_v34, 0.0  ;;  %v421_v47 = vsub.f32 1.0, %v420_v37  ;;  %v1098_v28 = vld [vmem:[%s1809_s5 + $0x8] sm:$0xf0]  ;;  %v1097_v30 = vld [vmem:[%s1809_s5 + $0x4] sm:$0xf] }
  0x2c   : > { %v406_v33 = vadd.f32 %v405_v22, %v404_v25  ;;  %v446_v50 = vsel %vm397_vm0, %v433_v40, 0.0  ;;  %v1063_v20 = vor.u32 %v1101_v18, %v1062_v15  ;;  %v1070_v22 = vld [vmem:[%s1809_s5 + $0x20] sm:$0xf]  ;;  %v1052_v31 = vld [vmem:[%s1809_s5 + $0xc] sm:$0xf0]  ;;  %s1706_s3 = scalar_lea.sflag [#allocation5], %s825_s25 }
  0x2d   : > { %v441_v43 = vadd.f32 %v440_v35, %v439_v38  ;;  %v448_v53 = vsel %vm397_vm0, %v434_v45, 0.0  ;;  %v422_v54 = vmul.f32 %v1231_v23, %v421_v47  ;;  %v1055_v34 = vor.u32 %v1097_v30, %v1052_v31  ;;  %v1099_v35 = vld [vmem:[%s1809_s5 + $0x10] sm:$0xf0]  ;;  %v620_v18 = vld [vmem:[%s1788_s6] sm:$0x7] }
  0x2e   : > { %v408_v39 = vadd.f32 %v407_v29, %v406_v33  ;;  %678 = vmatpush.bf16.msra.mxu2 %v1063_v20  ;;  %v1051_v29 = vor.u32 %v1098_v28, %v1050_v27  ;;  %v1058_v33 = vld [vmem:[%s1809_s5 + $0x8] sm:$0xf] }
  0x2f   : > { %v443_v48 = vadd.f32 %v442_v41, %v441_v43  ;;  %v423_v59 = vadd.f32 %v1231_v23, %v422_v54  ;;  %v1229_v54 = vld [vmem:[%s1811_s2] ss:$0 sm:$0xff]  ;;  %s879_s2 = scalar_lea.hbm %s1792_s10, %s1103_s18 }
  0x30   : > { %v410_v44 = vadd.f32 %v409_v36, %v408_v39  ;;  %v1059_v36 = vor.u32 %v1099_v35, %v1058_v33 }
  0x31   : > { %v445_v51 = vadd.f32 %v444_v46, %v443_v48  ;;  %v425_v0 = vsel %vm424_vm1, %v1231_v23, %v423_v59  ;;  %v1102_v23 = vld [vmem:[%s1809_s5 + $0x28] sm:$0xf0]  ;;  %v577_v48 = vld [vmem:[%s1810_s1] sm:$0x1]  ;;  %s1696_s1 = sshll.u32 %s879_s2, 4 }
  0x32   : > { %v412_v49 = vadd.f32 %v411_v42, %v410_v44  ;;  %v1071_v26 = vor.u32 %v1102_v23, %v1070_v22  ;;  %679 = vmatpush.bf16.msra.mxu2 %v1051_v29  ;;  %v1642_v29 = vperm.slane %v620_v18, 1  ;;  %1813 = sst [smem:[#allocation9_spill]] %s1696_s1 }
  0x33   : > { %v447_v55 = vadd.f32 %v446_v50, %v445_v51 }
  0x34   : > { %v413_v52 = vrot.slane %v412_v49, 4  ;;  %1175 = vmatpush.bf16.msrb.mxu1 %v1071_v26 }
  0x35   : > { %v449_v57 = vadd.f32 %v448_v53, %v447_v55 }
  0x36   : > { %v414_v56 = vadd.f32 %v413_v52, %v412_v49 }
  0x37   : > { %v450_v60 = vrot.slane %v449_v57, 4 }
  0x38   : > { %v415_v58 = vrot.slane %v414_v56, 2  ;;  %1176 = vmatpush.bf16.msrb.mxu1 %v1059_v36 }
  0x39   : > { %v451_v62 = vadd.f32 %v450_v60, %v449_v57 }
  0x3a   : > { %v416_v61 = vadd.f32 %v415_v58, %v414_v56 }
  0x3b   : > { %v452_v1 = vrot.slane %v451_v62, 2 }
  0x3c   : > { %v417_v63 = vrot.slane %v416_v61, 1 }
  0x3d   : > { %v453_v3 = vadd.f32 %v452_v1, %v451_v62 }
  0x3e   : > { %v418_v2 = vadd.f32 %v417_v63, %v416_v61 }
  0x3f   : > { %v454_v9 = vrot.slane %v453_v3, 1 }
  0x40   : > { %v426_v7 = vmul.f32 %v425_v0, %v418_v2 }
  0x41   : > { %v455_v10 = vadd.f32 %v454_v9, %v453_v3 }
  0x42   : > { %1044 = vmatmul.msk.f32.vlgmr.msra.gmra.mxu0 %vm397_vm0, %v426_v7 }
  0x43   : > { %550 = vmatpush.msra.mxu0 %v507_v16  ;;  %v456_v11 = vmul.f32 %v455_v10, %v425_v0  ;;  %v1100_v16 = vld [vmem:[%s1809_s5 + $0x1c] sm:$0xf]  ;;  %s845_s5 = scalar_lea.hbm %s1790_s8, %s1103_s18  ;;  %s1254_s18 = scalar_lea.hbm %s1791_s9, 64 }
  0x44   : > { %v1067_v25 = vor.u32 %v1100_v16, %v1064_v21  ;;  %v624_v16 = vperm.slane %v620_v18, 2  ;;  %v1640_v21 = vperm.slane %v620_v18, 0  ;;  %s1694_s0 = sshll.u32 %s845_s5, 4  ;;  %s849_s0 = int_to_ptr.hbm [resolvable:$true] %s1694_s0 }
  0x45   : > { %1045 = vmatmul.msk.f32.vlgmr.msra.gmra.mxu1 %vm397_vm0, %v456_v11 }
  0x46   : > { %707 = vmatpush.bf16.msra.mxu3 %v1067_v25 }
  0x4a   : > { %708 = vmatpush.bf16.msra.mxu3 %v1055_v34 }
  0xbf   : > { %v481_v13 = vpop.f32.mrf.mxu0 }
  0xc0   : > { %1046 = vmatmul.msk.f32.vlgmr.msrb.gmra.mxu0 %vm508_vm2, %v481_v13 }
  0xc1   : > { %736 = vmatpush.bf16.msrb.mxu0 %v1071_v26 }
  0xc2   : > { %v504_v14 = vpop.f32.mrf.mxu1 }
  0xc5   : > { %737 = vmatpush.bf16.msrb.mxu0 %v1059_v36 }
  0xc8   : > { %1047 = vmatmul.msk.f32.vlgmr.msra.gmra.mxu0 %vm508_vm2, %v504_v14 }
 0x13d   : > { %v529_v19 = vpop.f32.mrf.mxu0 }
 0x13e   : > { %v555_v37 = vmul.f32 %v529_v19, %v529_v19  ;;  %v568_v46 = vperm.slane %v529_v19, 0 }
 0x140   : > { %v569_v51 = vsub.f32 %v1491_v4, %v568_v46  ;;  %v570_v53 = vsub.f32 %v1494_v5, %v568_v46  ;;  %v571_v55 = vsub.f32 %v1497_v6, %v568_v46  ;;  %v572_v56 = vsub.f32 %v1500_v8, %v568_v46 }
 0x141   : > { %v573_v57 = vsub.f32 %v1509_v12, %v568_v46  ;;  %v574_v58 = vsub.f32 %v1519_v17, %v568_v46  ;;  %v575_v59 = vsub.f32 %v1530_v24, %v568_v46  ;;  %v576_v6 = vsub.f32 %v1540_v32, %v568_v46 }
 0x145   : > { %v552_v38 = vpop.f32.mrf.mxu0 }
 0x146   : > { %v556_v39 = vsub.f32 %v552_v38, %v555_v37 }
 0x148   : > { %v557_v40 = vadd.f32 1e-05, %v556_v39 }
 0x14a   : > { %1232 = vrsqrt.f32 %v557_v40  ;;  %vm564_vm4 = vweird.f32 %v557_v40 }
 0x150   : > { %v1233_v41 = vpop.eup %1232 }
 0x151   : > { %v559_v42 = vmul.f32 %v1233_v41, %v557_v40  ;;  %vm565_vm3 = vweird.f32 %v1233_v41 }
 0x152   : > { %vm566_vm5 = vmor %vm564_vm4, %vm565_vm3 }
 0x153   : > { %v560_v43 = vmul.f32 %v1233_v41, %v559_v42 }
 0x155   : > { %v561_v44 = vmul.f32 0.5, %v560_v43 }
 0x157   : > { %v562_v45 = vsub.f32 1.5, %v561_v44 }
 0x159   : > { %v563_v47 = vmul.f32 %v1233_v41, %v562_v45 }
 0x15b   : > { %v567_v49 = vsel %vm566_vm5, %v1233_v41, %v563_v47 }
 0x15c   : > { %v578_v50 = vmul.f32 %v577_v48, %v567_v49 }
 0x15e   : > { %v579_v52 = vperm.slane %v578_v50, 0 }
 0x160   : > { %v580_v60 = vmul.f32 %v579_v52, %v569_v51  ;;  %v581_v61 = vmul.f32 %v579_v52, %v570_v53  ;;  %v582_v4 = vmul.f32 %v579_v52, %v571_v55  ;;  %v583_v62 = vmul.f32 %v579_v52, %v572_v56 }
 0x161   : > { %v584_v5 = vmul.f32 %v579_v52, %v573_v57  ;;  %v585_v63 = vmul.f32 %v579_v52, %v574_v58  ;;  %v586_v8 = vmul.f32 %v579_v52, %v575_v59  ;;  %v587_v2 = vmul.f32 %v579_v52, %v576_v6 }
 0x162   : > { %v592_v0 = vadd.f32 %v1229_v54, %v580_v60  ;;  %v593_v12 = vadd.f32 %v1229_v54, %v581_v61  ;;  %v594_v1 = vadd.f32 %v1229_v54, %v582_v4  ;;  %v595_v17 = vadd.f32 %v1229_v54, %v583_v62 }
 0x163   : > { %v596_v7 = vadd.f32 %v1229_v54, %v584_v5  ;;  %v597_v9 = vadd.f32 %v1229_v54, %v585_v63  ;;  %v598_v32 = vadd.f32 %v1229_v54, %v586_v8  ;;  %v599_v10 = vadd.f32 %v1229_v54, %v587_v2 }
 0x164   : > { %600 = vst.msk [vmem:[%s387_s12] sm:$0xff] %vm397_vm0, %v592_v0  ;;  %v608_v24 = vpack.c.bf16 %v593_v12, %v592_v0  ;;  %v609_v3 = vpack.c.bf16 %v595_v17, %v594_v1 }
 0x165   : > { %601 = vst.msk [vmem:[%s387_s12 + $0x8] sm:$0xff] %vm397_vm0, %v593_v12  ;;  %v610_v11 = vpack.c.bf16 %v597_v9, %v596_v7  ;;  %v611_v13 = vpack.c.bf16 %v599_v10, %v598_v32 }
 0x166   : > { %1072 = vmatmul.msk.bf16.vlgmr.msra.gmra.mxu2 %vm397_vm0, %v608_v24  ;;  %1076 = vmatmul.msk.bf16.vlgmr.msra.gmra.mxu3 %vm397_vm0, %v608_v24  ;;  %602 = vst.msk [vmem:[%s387_s12 + $0x10] sm:$0xff] %vm397_vm0, %v594_v1 }
 0x167   : > { %1080 = vmatmul.msk.bf16.vlgmr.msrb.gmra.mxu0 %vm397_vm0, %v608_v24  ;;  %603 = vst.msk [vmem:[%s387_s12 + $0x18] sm:$0xff] %vm397_vm0, %v595_v17  ;;  %1081 = vmatmul.msk.bf16.vlgmr.msrb.gmra.mxu1 %vm397_vm0, %v609_v3 }
 0x168   : > { %604 = vst.msk [vmem:[%s387_s12 + $0x20] sm:$0xff] %vm397_vm0, %v596_v7 }
 0x169   : > { %605 = vst.msk [vmem:[%s387_s12 + $0x28] sm:$0xff] %vm397_vm0, %v597_v9 }
 0x16a   : > { %606 = vst.msk [vmem:[%s387_s12 + $0x30] sm:$0xff] %vm397_vm0, %v598_v32 }
 0x16b   : > { %607 = vst.msk [vmem:[%s387_s12 + $0x38] sm:$0xff] %vm397_vm0, %v599_v10 }
 0x176   : > { %1073 = vmatmul.msk.bf16.gmra.mxu2 %vm397_vm0, %v609_v3  ;;  %1077 = vmatmul.msk.bf16.gmra.mxu3 %vm397_vm0, %v609_v3 }
 0x177   : > { %1082 = vmatmul.msk.bf16.gmra.mxu1 %vm397_vm0, %v610_v11 }
 0x186   : > { %1074 = vmatmul.msk.bf16.gmra.mxu2 %vm397_vm0, %v610_v11  ;;  %1078 = vmatmul.msk.bf16.gmra.mxu3 %vm397_vm0, %v610_v11 }
 0x187   : > { %1083 = vmatmul.msk.bf16.gmra.mxu1 %vm397_vm0, %v611_v13 }
 0x196   : > { %1075 = vmatmul.msk.bf16.gmra.mxu2 %vm397_vm0, %v611_v13  ;;  %1079 = vmatmul.msk.bf16.gmra.mxu3 %vm397_vm0, %v611_v13 }
 0x1e4   : > { %v739_v14 = vpop.f32.mrf.mxu0  ;;  %v744_v15 = vpop.f32.mrf.mxu1 }
 0x1e5   : > { %v740_v25 = vadd.f32 %v739_v14, %v624_v16  ;;  %v745_v26 = vadd.f32 %v744_v15, %v624_v16 }
 0x1e9   : > { %v681_v19 = vpop.f32.mrf.mxu2  ;;  %v710_v20 = vpop.f32.mrf.mxu3 }
 0x1ea   : > { %v682_v33 = vadd.f32 %v681_v19, %v1640_v21  ;;  %v711_v36 = vadd.f32 %v710_v20, %v1642_v29 }
 0x1ec   : > { %v741_v22 = vpop.f32.mrf.mxu0  ;;  %v746_v23 = vpop.f32.mrf.mxu1  ;;  %v759_v39 = vmul.f32 0.17677669, %v682_v33 }
 0x1ed   : > { %v742_v27 = vadd.f32 %v741_v22, %v624_v16  ;;  %v747_v28 = vadd.f32 %v746_v23, %v624_v16 }
 0x1ef   : > { %v1149_v30 = vpack.c.bf16 %v742_v27, %v740_v25  ;;  %v1154_v31 = vpack.c.bf16 %v747_v28, %v745_v26 }
 0x1f1   : > { %1150 = vst [vmem:[%s1645_s27] sm:$0xff] %v1149_v30   ;;  %v683_v34 = vpop.f32.mrf.mxu2  ;;  %v712_v35 = vpop.f32.mrf.mxu3 }
 0x1f2   : > { %1172 = vst [vmem:[%s1645_s27 + $0x8] sm:$0xff] %v1154_v31   ;;  %v684_v37 = vadd.f32 %v683_v34, %v1640_v21  ;;  %v713_v38 = vadd.f32 %v712_v35, %v1642_v29 }
 0x1f4   : > { %v760_v40 = vmul.f32 0.17677669, %v684_v37  ;;  %v1129_v41 = vpack.c.bf16 %v713_v38, %v711_v36  ;;  %v749_v42 = vpop.f32.mrf.mxu1 }
 0x1f5   : > { %v750_v47 = vadd.f32 %v749_v42, %v624_v16 }
 0x1f6   : > { %v1109_v43 = vpack.c.bf16 %v760_v40, %v759_v39  ;;  %1130 = vst [vmem:[%s1652_s28] sm:$0xff] %v1129_v41  }
 0x1f8   : > { %1110 = vst [vmem:[%s1655_s29] sm:$0xff] %v1109_v43  }
 0x1f9   : > { %v686_v44 = vpop.f32.mrf.mxu2  ;;  %v715_v45 = vpop.f32.mrf.mxu3 }
 0x1fa   : > { %v687_v50 = vadd.f32 %v686_v44, %v1640_v21  ;;  %v716_v53 = vadd.f32 %v715_v45, %v1642_v29 }
 0x1fc   : > { %v751_v46 = vpop.f32.mrf.mxu1  ;;  %v761_v56 = vmul.f32 0.17677669, %v687_v50 }
 0x1fd   : > { %v752_v48 = vadd.f32 %v751_v46, %v624_v16 }
 0x1ff   : > { %v1159_v49 = vpack.c.bf16 %v752_v48, %v750_v47 }
 0x201   : > { %1173 = vst [vmem:[%s1645_s27 + $0x10] sm:$0xff] %v1159_v49   ;;  %v688_v51 = vpop.f32.mrf.mxu2  ;;  %v717_v52 = vpop.f32.mrf.mxu3 }
 0x202   : > { %v689_v54 = vadd.f32 %v688_v51, %v1640_v21  ;;  %v718_v55 = vadd.f32 %v717_v52, %v1642_v29 }
 0x204   : > { %v762_v57 = vmul.f32 0.17677669, %v689_v54  ;;  %v1134_v58 = vpack.c.bf16 %v718_v55, %v716_v53  ;;  %v754_v59 = vpop.f32.mrf.mxu1 }
 0x205   : > { %v755_v5 = vadd.f32 %v754_v59, %v624_v16 }
 0x206   : > { %v1114_v60 = vpack.c.bf16 %v762_v57, %v761_v56  ;;  %1169 = vst [vmem:[%s1652_s28 + $0x8] sm:$0xff] %v1134_v58  }
 0x208   : > { %1166 = vst [vmem:[%s1655_s29 + $0x8] sm:$0xff] %v1114_v60  }
 0x209   : > { %v691_v61 = vpop.f32.mrf.mxu2  ;;  %v720_v4 = vpop.f32.mrf.mxu3 }
 0x20a   : > { %v692_v8 = vadd.f32 %v691_v61, %v1640_v21  ;;  %v721_v1 = vadd.f32 %v720_v4, %v1642_v29 }
 0x20c   : > { %v756_v62 = vpop.f32.mrf.mxu1  ;;  %v763_v24 = vmul.f32 0.17677669, %v692_v8 }
 0x20d   : > { %v757_v63 = vadd.f32 %v756_v62, %v624_v16 }
 0x20f   : > { %v1164_v6 = vpack.c.bf16 %v757_v63, %v755_v5 }
 0x211   : > { %1174 = vst [vmem:[%s1645_s27 + $0x18] sm:$0xff] %v1164_v6   ;;  %v693_v0 = vpop.f32.mrf.mxu2  ;;  %v722_v12 = vpop.f32.mrf.mxu3  ;;  %s1689_s27 = sshll.u32 %s862_s20, 4  ;;  %s866_s27 = int_to_ptr.hbm [resolvable:$true] %s1689_s27 }
 0x212   : > { %v694_v17 = vadd.f32 %v693_v0, %v1640_v21  ;;  %v723_v2 = vadd.f32 %v722_v12, %v1642_v29  ;;  %s1248_s4 = sshra.s32 %s866_s27, 4  ;;  %s1249_s4 = int_to_ptr.hbm [resolvable:$true] %s1248_s4 }
 0x213   : > { %s1250_s2 = scalar_lea.hbm %s1249_s4, 32  ;;  %p1255_p0 = scmp.lt.s32.totalorder %s1249_s4, %s1791_s9 }
 0x214   : > { %v764_v3 = vmul.f32 0.17677669, %v694_v17  ;;  %v1139_v7 = vpack.c.bf16 %v723_v2, %v721_v1  ;;  %p1251_p11 = scmp.ne.s32.totalorder %s1249_s4, %s1250_s2  ;;  %p1256_p1 = scmp.lt.s32.totalorder %s1254_s18, %s1250_s2 }
 0x216   : > { %v1119_v9 = vpack.c.bf16 %v764_v3, %v763_v24  ;;  %1170 = vst [vmem:[%s1652_s28 + $0x10] sm:$0xff] %v1139_v7   ;;  %p1252_p12 = pnand %p1251_p11, %p1456_p5  ;;  %p1257_p2 = por %p1256_p1, %p1255_p0 }
 0x218   : > { %1167 = vst [vmem:[%s1655_s29 + $0x10] sm:$0xff] %v1119_v9   ;;  %p1253_p13 = pneg %p1252_p12 }
 0x219   : > { %v696_v32 = vpop.f32.mrf.mxu2  ;;  %v725_v10 = vpop.f32.mrf.mxu3 }
 0x21a   : > { %v697_v11 = vadd.f32 %v696_v32, %v1640_v21  ;;  %v726_v15 = vadd.f32 %v725_v10, %v1642_v29  ;;  %p1258_p3 = pnand %p1257_p2, %p1253_p13 }
 0x21c   : > { %v765_v19 = vmul.f32 0.17677669, %v697_v11 }
 0x221   : > { %v698_v13 = vpop.f32.mrf.mxu2  ;;  %v727_v14 = vpop.f32.mrf.mxu3 }
 0x222   : > { %v699_v18 = vadd.f32 %v698_v13, %v1640_v21  ;;  %v728_v16 = vadd.f32 %v727_v14, %v1642_v29 }
 0x224   : > { %v766_v20 = vmul.f32 0.17677669, %v699_v18  ;;  %v1144_v22 = vpack.c.bf16 %v728_v16, %v726_v15 }
 0x226   : > { %v1124_v23 = vpack.c.bf16 %v766_v20, %v765_v19  ;;  %1171 = vst [vmem:[%s1652_s28 + $0x18] sm:$0xff] %v1144_v22  }
 0x227   : > { %1261 = shalt.err (!%p1258_p3)
}
 0x228   : > { %s1359_s25 = smov 64   ;;  %s1360_s28 = smov 4   ;;  %1168 = vst [vmem:[%s1655_s29 + $0x18] sm:$0xff] %v1124_v23  }
 0x229   : > { %1178 = dma.vmem_to_hbm [thread:$0]  (%p1456_p5), %s1687_s30, 512, %s866_s27, %s1706_s3, %s1359_s25, %s1359_s25, %s1360_s28  }
 0x22a   : > { %s1814_s20 = sand.u32 1, %s1348_s14   ;;  %s1276_s2 = sshra.s32 %s849_s0, 4  ;;  %s1277_s2 = int_to_ptr.hbm [resolvable:$true] %s1276_s2 }
 0x22b   : > { %s821_s4 = scalar_lea.sflag [#allocation3], %s1814_s20  ;;  %s1278_s5 = scalar_lea.hbm %s1277_s2, 32 }
 0x22c   : > { %p1279_p4 = scmp.ne.s32.totalorder %s1277_s2, %s1278_s5  ;;  %s1282_s12 = scalar_lea.hbm %s1790_s8, 64 }
 0x22d   : > { %p1283_p9 = scmp.lt.s32.totalorder %s1277_s2, %s1790_s8  ;;  %p1284_p10 = scmp.lt.s32.totalorder %s1282_s12, %s1278_s5 }
 0x22e   : > { %p1280_p7 = pnand %p1279_p4, %p1456_p5 }
 0x22f   : > { %p1285_p11 = por %p1284_p10, %p1283_p9 }
 0x230   : > { %p1281_p8 = pneg %p1280_p7 }
 0x232   : > { %p1286_p12 = pnand %p1285_p11, %p1281_p8 }
 0x234   : > { %1289 = shalt.err (!%p1286_p12)
}
 0x235   : > { %s1815_s29 = sld [smem:[#allocation9_spill]]  ;;  %s1310_s5 = scalar_lea.hbm %s1792_s10, 64 }
 0x236   : > { %1177 = dma.vmem_to_hbm [thread:$0]  (%p1456_p5), %s1701_s26, 512, %s849_s0, %s821_s4, %s1359_s25, %s1359_s25, %s1360_s28  }
 0x23b   : > { %s1816_s30 = int_to_ptr.hbm [resolvable:$true] %s1815_s29 }
 0x23c   : > { %s1304_s27 = sshra.s32 %s1816_s30, 4  ;;  %s1305_s27 = int_to_ptr.hbm [resolvable:$true] %s1304_s27 }
 0x23d   : > { %s1306_s1 = scalar_lea.hbm %s1305_s27, 32  ;;  %p1311_p2 = scmp.lt.s32.totalorder %s1305_s27, %s1792_s10 }
 0x23e   : > { %p1307_p13 = scmp.ne.s32.totalorder %s1305_s27, %s1306_s1  ;;  %p1312_p3 = scmp.lt.s32.totalorder %s1310_s5, %s1306_s1 }
 0x240   : > { %p1308_p0 = pnand %p1307_p13, %p1456_p5  ;;  %p1313_p4 = por %p1312_p3, %p1311_p2 }
 0x242   : > { %p1309_p1 = pneg %p1308_p0 }
 0x244   : > { %p1314_p7 = pnand %p1313_p4, %p1309_p1 }
 0x246   : > { %1317 = shalt.err (!%p1314_p7)
}
 0x247   : > { %s1817_s26 = smov %s1816_s30 }
 0x248   : > { %1179 = dma.vmem_to_hbm [thread:$0]  (%p1456_p5), %s1699_s21, 512, %s1817_s26, %s1706_s3, %s1359_s25, %s1359_s25, %s1360_s28  }
 0x249 PF: > { %p1193_p8 = scmp.ge.s32.totalorder %s1356_s16, 2  ;;  %s905_s0 = sand.u32 1, %s1344_s13  }
 0x24a   : > { %s906_s4 = scalar_lea.sflag [#allocation3], %s905_s0 }
 0x24b   : > { %p1184_p9 = pnand %p1193_p8, %p1460_p6 }
 0x24d   : > { %p1185_p10 = pneg %p1184_p9 }
 0x24f   : > { %1335 = dma.done.wait (%p1185_p10), %s906_s4, 512  }
 0x250   : > { %1337 = vsyncadd (%p1185_p10), %s906_s4, 4294966784  ;;  %s1818_s23 = sadd.s32 4294967294, %s1356_s16  }
 0x251   : > { %s915_s12 = sand.u32 1, %s1818_s23  }
 0x252   : > { %s916_s11 = scalar_lea.sflag [#allocation5], %s915_s12 }
 0x253   : > { %1339 = dma.done.wait (%p1185_p10), %s916_s11, 1024  }
 0x254   : > { %1341 = vsyncadd (%p1185_p10), %s916_s11, 4294966272  ;;  %p24_p5 = scmp.ge.s32.totalorder %s1441_s19, 4   ;;  %s1819_s13 = smov %s1348_s14 }
 0x255   : > { %s1820_s14 = smov %s1352_s15  ;;  %s1821_s15 = smov %s1454_s22 }
 0x256   : > { %s1822_s16 = smov %s1441_s19  ;;  %26 = sbr.rel (!%p24_p5) target bundleno = 12 (0xc), region = 127 }
 0x25b   :  { %932 = vsyncpa [#allocation3], 1 }
 0x25c   :  { %934 = vsyncpa [#allocation3 + $0x1], 1 }
 0x25d   :  { %935 = vsyncpa [#allocation5], 1 }
 0x25e   :  { %937 = vsyncpa [#allocation5 + $0x1], 1 }

</bundles_post_ra>
